<compile_context>
chip_gen: v5e
topology: v5e:2x2
jax: 0.10.0
libtpu: 0.0.40
codegen_flags: <defaults>
</compile_context>

<pallas_src>
import jax
import jax.numpy as jnp
from jax import lax
from jax.experimental import pallas as pl
from jax.experimental.pallas import tpu as pltpu

EPS = 1e-5
LANE = 128


def _round_up(n, m):
    return ((n + m - 1) // m) * m


def dqn_kernel(x_ref, w_ref, v_ref, out_ref):
    """Whole DQN forward for one independent sub-batch, fully VMEM-resident.

    x_ref  : (B, Lp)      f32, zero-padded input (batch on sublanes, features on lanes)
    w_ref  : (4, Lp, Lp)  bf16 padded weights, stored (in, out); slice 3 = head
    v_ref  : (4, 8, Lp)   f32; [l,0]=bias, [l,1]=gamma, [l,2]=beta for layer l<3,
                          [3,0]=head bias.  Each layer owns one aligned 8-row tile.
    out_ref: (B, Lp)      f32, lane-dense output (first out_dim columns valid)
    """
    h = x_ref[...]                                     # f32 activations

    for l in range(3):                                 # static unroll: 3 hidden layers
        v = v_ref[l]                                   # (8, Lp)
        b, g, be = v[0:1, :], v[1:2, :], v[2:3, :]

        # Linear on the MXU (bf16 x bf16 -> f32 acc) + bias + ReLU (VPU, f32)
        h = jnp.dot(h.astype(jnp.bfloat16), w_ref[l],
                    preferred_element_type=jnp.float32) + b
        h = jnp.maximum(h, 0.0)

        # training-mode BatchNorm1d, two-pass variance, folded to scale/shift
        m = jnp.mean(h, axis=0, keepdims=True)
        var = jnp.mean((h - m) * (h - m), axis=0, keepdims=True)
        scale = g * lax.rsqrt(var + EPS)               # rsqrt -> EUP slot
        shift = be - m * scale
        h = h * scale + shift                          # padded cols stay 0 (g=b=0)

    bo = v_ref[3][0:1, :]
    out_ref[...] = jnp.dot(h.astype(jnp.bfloat16), w_ref[3],
                           preferred_element_type=jnp.float32) + bo


def pack_params(params, state_dim, layer_size, out_dim):
    """Pack all parameters into two contiguous, lane-padded slabs."""
    Lp = _round_up(max(state_dim, layer_size, out_dim), LANE)

    def pad2(a, rows, cols):
        return jnp.zeros((rows, cols), jnp.float32).at[:a.shape[0], :a.shape[1]].set(a)

    w_stack = jnp.stack([
        pad2(params["w1"], Lp, Lp),
        pad2(params["w2"], Lp, Lp),
        pad2(params["w3"], Lp, Lp),
        pad2(params["wo"], Lp, Lp),      # head weight as slice 3
    ]).astype(jnp.bfloat16)              # (4, Lp, Lp) bf16

    def layer_tile(b, g, be):
        t = jnp.zeros((8, Lp), jnp.float32)
        t = t.at[0:1, :b.shape[1]].set(b)
        t = t.at[1:2, :g.shape[1]].set(g)
        t = t.at[2:3, :be.shape[1]].set(be)
        return t

    vec = jnp.stack([
        layer_tile(params["b1"], params["g1"], params["be1"]),
        layer_tile(params["b2"], params["g2"], params["be2"]),
        layer_tile(params["b3"], params["g3"], params["be3"]),
        jnp.zeros((8, Lp), jnp.float32).at[0:1, :out_dim].set(params["bo"]),
    ])                                   # (4, 8, Lp) f32

    return {"w_stack": w_stack, "vec": vec, "Lp": Lp,
            "state_dim": state_dim, "out_dim": out_dim}


def dqn_forward(x, packed):
    """x: (G, B, state_dim) f32 = G independent sub-batches, or (B, state_dim)."""
    squeeze = (x.ndim == 2)
    if squeeze:
        x = x[None]
    G, B, sd = x.shape
    Lp, od = packed["Lp"], packed["out_dim"]

    x_pad = jnp.zeros((G, B, Lp), jnp.float32).at[:, :, :sd].set(x)

    # Explicit scoped-VMEM budget: per-block double buffers + resident slabs.
    bytes_needed = (2 * B * Lp * 4          # x blocks
                    + 2 * 4 * Lp * Lp * 2   # bf16 weight stack
                    + 2 * 4 * 8 * Lp * 4    # bias/gamma/beta slab
                    + 2 * B * Lp * 4)       # out blocks
    vmem_limit = min(max(bytes_needed + (8 << 20), 32 << 20), 64 << 20)

    out = pl.pallas_call(
        dqn_kernel,
        out_shape=jax.ShapeDtypeStruct((G, B, Lp), jnp.float32),
        grid=(G,),
        in_specs=[
            pl.BlockSpec((None, B, Lp), lambda g: (g, 0, 0)),   # per-sub-batch input
            pl.BlockSpec((4, Lp, Lp), lambda g: (0, 0, 0)),     # weights: fetched once
            pl.BlockSpec((4, 8, Lp), lambda g: (0, 0, 0)),      # bias/gamma/beta slab
        ],
        out_specs=pl.BlockSpec((None, B, Lp), lambda g: (g, 0, 0)),
        compiler_params=pltpu.CompilerParams(
            dimension_semantics=("parallel",),
            vmem_limit_bytes=vmem_limit),
    )(x_pad, packed["w_stack"], packed["vec"])

    out = out[:, :, :od]
    return out[0] if squeeze else out


def init_params(key, state_dim, out_dim, layer_size):
    """PyTorch-like Linear init (uniform +/- 1/sqrt(fan_in)); BN gamma=1, beta=0.
    Weights stored pre-transposed as (in, out)."""
    def linear_init(k, fan_in, fan_out):
        kw, kb = jax.random.split(k)
        bound = 1.0 / jnp.sqrt(float(fan_in))
        w = jax.random.uniform(kw, (fan_in, fan_out), jnp.float32, -bound, bound)
        b = jax.random.uniform(kb, (1, fan_out), jnp.float32, -bound, bound)
        return w, b

    k1, k2, k3, k4 = jax.random.split(key, 4)
    w1, b1 = linear_init(k1, state_dim, layer_size)
    w2, b2 = linear_init(k2, layer_size, layer_size)
    w3, b3 = linear_init(k3, layer_size, layer_size)
    wo, bo = linear_init(k4, layer_size, out_dim)

    ones = jnp.ones((1, layer_size), jnp.float32)
    zeros = jnp.zeros((1, layer_size), jnp.float32)
    return {
        "w1": w1, "b1": b1, "g1": ones, "be1": zeros,
        "w2": w2, "b2": b2, "g2": ones, "be2": zeros,
        "w3": w3, "b3": b3, "g3": ones, "be3": zeros,
        "wo": wo, "bo": bo,
    }


def dqn_reference(x, p):
    """Pure-JAX reference for one sub-batch, mirroring the kernel's bf16 weight/
    activation rounding (f32 accumulation) so the check is tight."""
    def q(a):
        return a.astype(jnp.bfloat16).astype(jnp.float32)

    def bn(h, g, b):
        m = jnp.mean(h, axis=0, keepdims=True)
        v = jnp.mean((h - m) ** 2, axis=0, keepdims=True)
        return g * (h - m) * lax.rsqrt(v + EPS) + b

    h = jnp.maximum(jnp.dot(q(x), q(p["w1"]),
                            preferred_element_type=jnp.float32) + p["b1"], 0.0)
    h = bn(h, p["g1"], p["be1"])
    h = jnp.maximum(jnp.dot(q(h), q(p["w2"]),
                            preferred_element_type=jnp.float32) + p["b2"], 0.0)
    h = bn(h, p["g2"], p["be2"])
    h = jnp.maximum(jnp.dot(q(h), q(p["w3"]),
                            preferred_element_type=jnp.float32) + p["b3"], 0.0)
    h = bn(h, p["g3"], p["be3"])
    return jnp.dot(q(h), q(p["wo"]), preferred_element_type=jnp.float32) + p["bo"]


if __name__ == "__main__":
    G, B, state_dim, layer_size, out_dim = 2, 8, 16, 32, 4

    key = jax.random.PRNGKey(0)
    kx, kp = jax.random.split(key)
    x = jax.random.normal(kx, (G, B, state_dim), jnp.float32)
    params = init_params(kp, state_dim, out_dim, layer_size)
    packed = pack_params(params, state_dim, layer_size, out_dim)

    # Multi-sub-batch path (parallel grid axis).
    out = jax.block_until_ready(dqn_forward(x, packed))
    assert out.shape == (G, B, out_dim)
    ref = jnp.stack([dqn_reference(x[g], params) for g in range(G)])
    assert jnp.allclose(out, ref, atol=2e-3, rtol=2e-3), "mismatch vs JAX reference"

    # Single-batch convenience path.
    out1 = jax.block_until_ready(dqn_forward(x[0], packed))
    assert out1.shape == (B, out_dim)
    assert jnp.allclose(out1, ref[0], atol=2e-3, rtol=2e-3), "mismatch (single batch)"

    print("KERNEL_OK")
</pallas_src>

<mosaic_0001>
module attributes {stable_mosaic.version = 11 : i64} {
  func.func @dqn_kernel(%arg0: i32, %arg1: memref<1x8x128xf32, #tpu.memory_space<vmem>>, %arg2: memref<4x128x128xbf16, #tpu.memory_space<vmem>>, %arg3: memref<4x8x128xf32, #tpu.memory_space<vmem>>, %arg4: memref<1x8x128xf32, #tpu.memory_space<vmem>>) attributes {dimension_semantics = [#tpu.dimension_semantics<parallel>], iteration_bounds = array<i64: 2>, scalar_prefetch = 0 : i64, scratch_operands = 0 : i64, tpu.core_type = #tpu.core_type<tc>, window_params = [{transform_indices = @transform_0, window_bounds = array<i64: 1, 8, 128>}, {pipeline_mode = #tpu.pipeline_mode<synchronous>, transform_indices = @transform_1, window_bounds = array<i64: 4, 128, 128>}, {pipeline_mode = #tpu.pipeline_mode<synchronous>, transform_indices = @transform_2, window_bounds = array<i64: 4, 8, 128>}, {transform_indices = @transform_3, window_bounds = array<i64: 1, 8, 128>}]} {
    %c0 = arith.constant 0 : index
    %c0_0 = arith.constant 0 : index
    %c0_1 = arith.constant 0 : index
    %0 = vector.load %arg1[%c0, %c0_0, %c0_1] : memref<1x8x128xf32, #tpu.memory_space<vmem>>, vector<1x8x128xf32>
    %1 = vector.shape_cast %0 : vector<1x8x128xf32> to vector<8x128xf32>
    %c0_2 = arith.constant 0 : index
    %c0_3 = arith.constant 0 : index
    %c0_4 = arith.constant 0 : index
    %2 = vector.load %arg3[%c0_2, %c0_3, %c0_4] : memref<4x8x128xf32, #tpu.memory_space<vmem>>, vector<1x8x128xf32>
    %3 = vector.shape_cast %2 : vector<1x8x128xf32> to vector<8x128xf32>
    %4 = vector.extract_strided_slice %3 {offsets = [0, 0], sizes = [1, 128], strides = [1, 1]} : vector<8x128xf32> to vector<1x128xf32>
    %5 = vector.extract_strided_slice %3 {offsets = [1, 0], sizes = [1, 128], strides = [1, 1]} : vector<8x128xf32> to vector<1x128xf32>
    %6 = vector.extract_strided_slice %3 {offsets = [2, 0], sizes = [1, 128], strides = [1, 1]} : vector<8x128xf32> to vector<1x128xf32>
    %7 = arith.truncf %1 : vector<8x128xf32> to vector<8x128xbf16>
    %c0_5 = arith.constant 0 : index
    %c0_6 = arith.constant 0 : index
    %c0_7 = arith.constant 0 : index
    %8 = vector.load %arg2[%c0_5, %c0_6, %c0_7] : memref<4x128x128xbf16, #tpu.memory_space<vmem>>, vector<1x128x128xbf16>
    %9 = vector.shape_cast %8 : vector<1x128x128xbf16> to vector<128x128xbf16>
    %cst = arith.constant dense<0.000000e+00> : vector<8x128xf32>
    %10 = tpu.matmul %7, %9, %cst {dimension_numbers = #tpu.dot_dimension_numbers<[1], [0], [0], [1], [0, 0, 1, 1], [], []>} : vector<8x128xbf16>, vector<128x128xbf16>, vector<8x128xf32> -> vector<8x128xf32>
    %11 = vector.broadcast %4 : vector<1x128xf32> to vector<8x128xf32>
    %12 = arith.addf %10, %11 : vector<8x128xf32>
    %cst_8 = arith.constant 0.000000e+00 : f32
    %13 = vector.broadcast %cst_8 : f32 to vector<8x128xf32>
    %14 = arith.maximumf %12, %13 : vector<8x128xf32>
    %cst_9 = arith.constant dense<0.000000e+00> : vector<128xf32>
    %15 = vector.multi_reduction <add>, %14, %cst_9 [0] : vector<8x128xf32> to vector<128xf32>
    %16 = vector.shape_cast %15 : vector<128xf32> to vector<1x128xf32>
    %cst_10 = arith.constant 8.000000e+00 : f32
    %17 = vector.broadcast %cst_10 : f32 to vector<1x128xf32>
    %18 = arith.divf %16, %17 : vector<1x128xf32>
    %19 = vector.broadcast %18 : vector<1x128xf32> to vector<8x128xf32>
    %20 = arith.subf %14, %19 : vector<8x128xf32>
    %21 = vector.broadcast %18 : vector<1x128xf32> to vector<8x128xf32>
    %22 = arith.subf %14, %21 : vector<8x128xf32>
    %23 = arith.mulf %20, %22 : vector<8x128xf32>
    %cst_11 = arith.constant dense<0.000000e+00> : vector<128xf32>
    %24 = vector.multi_reduction <add>, %23, %cst_11 [0] : vector<8x128xf32> to vector<128xf32>
    %25 = vector.shape_cast %24 : vector<128xf32> to vector<1x128xf32>
    %cst_12 = arith.constant 8.000000e+00 : f32
    %26 = vector.broadcast %cst_12 : f32 to vector<1x128xf32>
    %27 = arith.divf %25, %26 : vector<1x128xf32>
    %cst_13 = arith.constant 9.99999974E-6 : f32
    %28 = vector.broadcast %cst_13 : f32 to vector<1x128xf32>
    %29 = arith.addf %27, %28 : vector<1x128xf32>
    %30 = math.rsqrt %29 : vector<1x128xf32>
    %31 = arith.mulf %5, %30 : vector<1x128xf32>
    %32 = arith.mulf %18, %31 : vector<1x128xf32>
    %33 = arith.subf %6, %32 : vector<1x128xf32>
    %34 = vector.broadcast %31 : vector<1x128xf32> to vector<8x128xf32>
    %35 = arith.mulf %14, %34 : vector<8x128xf32>
    %36 = vector.broadcast %33 : vector<1x128xf32> to vector<8x128xf32>
    %37 = arith.addf %35, %36 : vector<8x128xf32>
    %c1 = arith.constant 1 : index
    %c0_14 = arith.constant 0 : index
    %c0_15 = arith.constant 0 : index
    %38 = vector.load %arg3[%c1, %c0_14, %c0_15] : memref<4x8x128xf32, #tpu.memory_space<vmem>>, vector<1x8x128xf32>
    %39 = vector.shape_cast %38 : vector<1x8x128xf32> to vector<8x128xf32>
    %40 = vector.extract_strided_slice %39 {offsets = [0, 0], sizes = [1, 128], strides = [1, 1]} : vector<8x128xf32> to vector<1x128xf32>
    %41 = vector.extract_strided_slice %39 {offsets = [1, 0], sizes = [1, 128], strides = [1, 1]} : vector<8x128xf32> to vector<1x128xf32>
    %42 = vector.extract_strided_slice %39 {offsets = [2, 0], sizes = [1, 128], strides = [1, 1]} : vector<8x128xf32> to vector<1x128xf32>
    %43 = arith.truncf %37 : vector<8x128xf32> to vector<8x128xbf16>
    %c1_16 = arith.constant 1 : index
    %c0_17 = arith.constant 0 : index
    %c0_18 = arith.constant 0 : index
    %44 = vector.load %arg2[%c1_16, %c0_17, %c0_18] : memref<4x128x128xbf16, #tpu.memory_space<vmem>>, vector<1x128x128xbf16>
    %45 = vector.shape_cast %44 : vector<1x128x128xbf16> to vector<128x128xbf16>
    %cst_19 = arith.constant dense<0.000000e+00> : vector<8x128xf32>
    %46 = tpu.matmul %43, %45, %cst_19 {dimension_numbers = #tpu.dot_dimension_numbers<[1], [0], [0], [1], [0, 0, 1, 1], [], []>} : vector<8x128xbf16>, vector<128x128xbf16>, vector<8x128xf32> -> vector<8x128xf32>
    %47 = vector.broadcast %40 : vector<1x128xf32> to vector<8x128xf32>
    %48 = arith.addf %46, %47 : vector<8x128xf32>
    %cst_20 = arith.constant 0.000000e+00 : f32
    %49 = vector.broadcast %cst_20 : f32 to vector<8x128xf32>
    %50 = arith.maximumf %48, %49 : vector<8x128xf32>
    %cst_21 = arith.constant dense<0.000000e+00> : vector<128xf32>
    %51 = vector.multi_reduction <add>, %50, %cst_21 [0] : vector<8x128xf32> to vector<128xf32>
    %52 = vector.shape_cast %51 : vector<128xf32> to vector<1x128xf32>
    %cst_22 = arith.constant 8.000000e+00 : f32
    %53 = vector.broadcast %cst_22 : f32 to vector<1x128xf32>
    %54 = arith.divf %52, %53 : vector<1x128xf32>
    %55 = vector.broadcast %54 : vector<1x128xf32> to vector<8x128xf32>
    %56 = arith.subf %50, %55 : vector<8x128xf32>
    %57 = vector.broadcast %54 : vector<1x128xf32> to vector<8x128xf32>
    %58 = arith.subf %50, %57 : vector<8x128xf32>
    %59 = arith.mulf %56, %58 : vector<8x128xf32>
    %cst_23 = arith.constant dense<0.000000e+00> : vector<128xf32>
    %60 = vector.multi_reduction <add>, %59, %cst_23 [0] : vector<8x128xf32> to vector<128xf32>
    %61 = vector.shape_cast %60 : vector<128xf32> to vector<1x128xf32>
    %cst_24 = arith.constant 8.000000e+00 : f32
    %62 = vector.broadcast %cst_24 : f32 to vector<1x128xf32>
    %63 = arith.divf %61, %62 : vector<1x128xf32>
    %cst_25 = arith.constant 9.99999974E-6 : f32
    %64 = vector.broadcast %cst_25 : f32 to vector<1x128xf32>
    %65 = arith.addf %63, %64 : vector<1x128xf32>
    %66 = math.rsqrt %65 : vector<1x128xf32>
    %67 = arith.mulf %41, %66 : vector<1x128xf32>
    %68 = arith.mulf %54, %67 : vector<1x128xf32>
    %69 = arith.subf %42, %68 : vector<1x128xf32>
    %70 = vector.broadcast %67 : vector<1x128xf32> to vector<8x128xf32>
    %71 = arith.mulf %50, %70 : vector<8x128xf32>
    %72 = vector.broadcast %69 : vector<1x128xf32> to vector<8x128xf32>
    %73 = arith.addf %71, %72 : vector<8x128xf32>
    %c2 = arith.constant 2 : index
    %c0_26 = arith.constant 0 : index
    %c0_27 = arith.constant 0 : index
    %74 = vector.load %arg3[%c2, %c0_26, %c0_27] : memref<4x8x128xf32, #tpu.memory_space<vmem>>, vector<1x8x128xf32>
    %75 = vector.shape_cast %74 : vector<1x8x128xf32> to vector<8x128xf32>
    %76 = vector.extract_strided_slice %75 {offsets = [0, 0], sizes = [1, 128], strides = [1, 1]} : vector<8x128xf32> to vector<1x128xf32>
    %77 = vector.extract_strided_slice %75 {offsets = [1, 0], sizes = [1, 128], strides = [1, 1]} : vector<8x128xf32> to vector<1x128xf32>
    %78 = vector.extract_strided_slice %75 {offsets = [2, 0], sizes = [1, 128], strides = [1, 1]} : vector<8x128xf32> to vector<1x128xf32>
    %79 = arith.truncf %73 : vector<8x128xf32> to vector<8x128xbf16>
    %c2_28 = arith.constant 2 : index
    %c0_29 = arith.constant 0 : index
    %c0_30 = arith.constant 0 : index
    %80 = vector.load %arg2[%c2_28, %c0_29, %c0_30] : memref<4x128x128xbf16, #tpu.memory_space<vmem>>, vector<1x128x128xbf16>
    %81 = vector.shape_cast %80 : vector<1x128x128xbf16> to vector<128x128xbf16>
    %cst_31 = arith.constant dense<0.000000e+00> : vector<8x128xf32>
    %82 = tpu.matmul %79, %81, %cst_31 {dimension_numbers = #tpu.dot_dimension_numbers<[1], [0], [0], [1], [0, 0, 1, 1], [], []>} : vector<8x128xbf16>, vector<128x128xbf16>, vector<8x128xf32> -> vector<8x128xf32>
    %83 = vector.broadcast %76 : vector<1x128xf32> to vector<8x128xf32>
    %84 = arith.addf %82, %83 : vector<8x128xf32>
    %cst_32 = arith.constant 0.000000e+00 : f32
    %85 = vector.broadcast %cst_32 : f32 to vector<8x128xf32>
    %86 = arith.maximumf %84, %85 : vector<8x128xf32>
    %cst_33 = arith.constant dense<0.000000e+00> : vector<128xf32>
    %87 = vector.multi_reduction <add>, %86, %cst_33 [0] : vector<8x128xf32> to vector<128xf32>
    %88 = vector.shape_cast %87 : vector<128xf32> to vector<1x128xf32>
    %cst_34 = arith.constant 8.000000e+00 : f32
    %89 = vector.broadcast %cst_34 : f32 to vector<1x128xf32>
    %90 = arith.divf %88, %89 : vector<1x128xf32>
    %91 = vector.broadcast %90 : vector<1x128xf32> to vector<8x128xf32>
    %92 = arith.subf %86, %91 : vector<8x128xf32>
    %93 = vector.broadcast %90 : vector<1x128xf32> to vector<8x128xf32>
    %94 = arith.subf %86, %93 : vector<8x128xf32>
    %95 = arith.mulf %92, %94 : vector<8x128xf32>
    %cst_35 = arith.constant dense<0.000000e+00> : vector<128xf32>
    %96 = vector.multi_reduction <add>, %95, %cst_35 [0] : vector<8x128xf32> to vector<128xf32>
    %97 = vector.shape_cast %96 : vector<128xf32> to vector<1x128xf32>
    %cst_36 = arith.constant 8.000000e+00 : f32
    %98 = vector.broadcast %cst_36 : f32 to vector<1x128xf32>
    %99 = arith.divf %97, %98 : vector<1x128xf32>
    %cst_37 = arith.constant 9.99999974E-6 : f32
    %100 = vector.broadcast %cst_37 : f32 to vector<1x128xf32>
    %101 = arith.addf %99, %100 : vector<1x128xf32>
    %102 = math.rsqrt %101 : vector<1x128xf32>
    %103 = arith.mulf %77, %102 : vector<1x128xf32>
    %104 = arith.mulf %90, %103 : vector<1x128xf32>
    %105 = arith.subf %78, %104 : vector<1x128xf32>
    %106 = vector.broadcast %103 : vector<1x128xf32> to vector<8x128xf32>
    %107 = arith.mulf %86, %106 : vector<8x128xf32>
    %108 = vector.broadcast %105 : vector<1x128xf32> to vector<8x128xf32>
    %109 = arith.addf %107, %108 : vector<8x128xf32>
    %c3 = arith.constant 3 : index
    %c0_38 = arith.constant 0 : index
    %c0_39 = arith.constant 0 : index
    %110 = vector.load %arg3[%c3, %c0_38, %c0_39] : memref<4x8x128xf32, #tpu.memory_space<vmem>>, vector<1x8x128xf32>
    %111 = vector.shape_cast %110 : vector<1x8x128xf32> to vector<8x128xf32>
    %112 = vector.extract_strided_slice %111 {offsets = [0, 0], sizes = [1, 128], strides = [1, 1]} : vector<8x128xf32> to vector<1x128xf32>
    %113 = arith.truncf %109 : vector<8x128xf32> to vector<8x128xbf16>
    %c3_40 = arith.constant 3 : index
    %c0_41 = arith.constant 0 : index
    %c0_42 = arith.constant 0 : index
    %114 = vector.load %arg2[%c3_40, %c0_41, %c0_42] : memref<4x128x128xbf16, #tpu.memory_space<vmem>>, vector<1x128x128xbf16>
    %115 = vector.shape_cast %114 : vector<1x128x128xbf16> to vector<128x128xbf16>
    %cst_43 = arith.constant dense<0.000000e+00> : vector<8x128xf32>
    %116 = tpu.matmul %113, %115, %cst_43 {dimension_numbers = #tpu.dot_dimension_numbers<[1], [0], [0], [1], [0, 0, 1, 1], [], []>} : vector<8x128xbf16>, vector<128x128xbf16>, vector<8x128xf32> -> vector<8x128xf32>
    %117 = vector.broadcast %112 : vector<1x128xf32> to vector<8x128xf32>
    %118 = arith.addf %116, %117 : vector<8x128xf32>
    %c0_44 = arith.constant 0 : index
    %c0_45 = arith.constant 0 : index
    %c0_46 = arith.constant 0 : index
    %119 = vector.load %arg4[%c0_44, %c0_45, %c0_46] : memref<1x8x128xf32, #tpu.memory_space<vmem>>, vector<1x8x128xf32>
    %120 = vector.shape_cast %119 : vector<1x8x128xf32> to vector<8x128xf32>
    %121 = vector.shape_cast %118 : vector<8x128xf32> to vector<1x8x128xf32>
    tpu.vector_store %arg4[%c0_44, %c0_45, %c0_46], %121 {strides = array<i32>} : memref<1x8x128xf32, #tpu.memory_space<vmem>>, vector<1x8x128xf32>,
    return
  }
  func.func @transform_0(%arg0: i32) -> (i32, i32, i32) {
    %c0_i32 = arith.constant 0 : i32
    %c0_i32_0 = arith.constant 0 : i32
    %c0_i32_1 = arith.constant 0 : i32
    return %arg0, %c0_i32, %c0_i32_0 : i32, i32, i32
  }
  func.func @transform_1(%arg0: i32) -> (i32, i32, i32) {
    %c0_i32 = arith.constant 0 : i32
    %c0_i32_0 = arith.constant 0 : i32
    %c0_i32_1 = arith.constant 0 : i32
    %c0_i32_2 = arith.constant 0 : i32
    return %c0_i32, %c0_i32_0, %c0_i32_1 : i32, i32, i32
  }
  func.func @transform_2(%arg0: i32) -> (i32, i32, i32) {
    %c0_i32 = arith.constant 0 : i32
    %c0_i32_0 = arith.constant 0 : i32
    %c0_i32_1 = arith.constant 0 : i32
    %c0_i32_2 = arith.constant 0 : i32
    return %c0_i32, %c0_i32_0, %c0_i32_1 : i32, i32, i32
  }
  func.func @transform_3(%arg0: i32) -> (i32, i32, i32) {
    %c0_i32 = arith.constant 0 : i32
    %c0_i32_0 = arith.constant 0 : i32
    %c0_i32_1 = arith.constant 0 : i32
    return %arg0, %c0_i32, %c0_i32_0 : i32, i32, i32
  }
}

</mosaic_0001>

<bundles_post_ra>
// kernel: tpu_custom_call.1
= control target key start
LH: loop header
LB: loop body
LE: loop exit
PB: predicated region body
PF: predicated region fallthrough
CT: control target
= control target key end

     0   :  { %8 = vsyncpa [#allocation3], 0  ;;  %s1377_s0 = inlined_call_operand.hbm [shape: f32[2,8,128], index: 0, kind: input, shape index: {}]   ;;  %s1378_s1 = inlined_call_operand.hbm [shape: bf16[4,128,128], index: 1, kind: input, shape index: {}]   ;;  %s1379_s2 = inlined_call_operand.hbm [shape: f32[4,8,128], index: 2, kind: input, shape index: {}]   ;;  %s1380_s3 = inlined_call_operand.hbm [shape: f32[2,8,128], index: 3, kind: output, shape index: {}]  }
   0x1   :  { %10 = vsyncpa [#allocation3 + $0x1], 0 }
   0x2   :  { %11 = vsyncpa [#allocation6], 0 }
   0x3   :  { %12 = vsyncpa [#allocation4], 0 }
   0x4   :  { %14 = vsyncpa [#allocation4 + $0x1], 0  ;;  %s1220_s12 = smov 0   ;;  %s1222_s13 = smov 0  }
   0x5   :  { %s1224_s14 = smov 0   ;;  %s1226_s15 = smov 0  }
   0x6 LB: > { %s130_s18 = sshll.u32 %s1378_s1, 4  ;;  %s1244_s19 = sadd.s32 4294967295, %s1191_s15   ;;  %s1191_s15 = sphi %s1226_s15, %s1391_s15   ;;  %s1187_s14 = sphi %s1224_s14, %s1390_s14   ;;  %s1183_s13 = sphi %s1222_s13, %s1389_s13   ;;  %s1179_s12 = sphi %s1220_s12, %s1388_s12   ;;  %s131_s18 = int_to_ptr.hbm [resolvable:$true] %s130_s18 }
   0x7   : > { %p776_p0 = scmp.ge.s32.totalorder %s1191_s15, 1  ;;  %p41_p1 = scmp.eq.s32.totalorder %s1244_s19, 0 }
   0x8   : > { %p119_p2 = scmp.lt.s32.totalorder %s1191_s15, 3  ;;  %s1193_s21 = smov [#allocation5]  }
   0x9   : > { %s132_s22 = sshll.u32 %s1193_s21, 4  ;;  %s144_s25 = sshll.u32 %s1379_s2, 4  ;;  %s133_s22 = int_to_ptr.vmem [resolvable:$true] %s132_s22  ;;  %s145_s25 = int_to_ptr.hbm [resolvable:$true] %s144_s25 }
   0xa   : > { %p1249_p3 = pnand %p776_p0, %p119_p2  ;;  %s1194_s26 = smov [#allocation7]  }
   0xb   : > { %s146_s27 = sshll.u32 %s1194_s26, 4  ;;  %s1195_s28 = smov 64   ;;  %s147_s27 = int_to_ptr.vmem [resolvable:$true] %s146_s27 }
   0xc   : > { %p963_p4 = pneg %p1249_p3  ;;  %s1196_s29 = smov 4  }
   0xd   : > { %s1197_s30 = smov 128   ;;  %s1198_s4 = smov 8  }
   0xe   : > { %p964_p6 = pnand %p963_p4, %p41_p1  ;;  %s775_s5 = sadd.s32 4294967294, %s1191_s15  }
   0xf   : > { %s1263_s6 = sadd.s32 1, %s1191_s15   ;;  %s27_s8 = sadd.s32 1, %s1187_s14 }
  0x10   : > { %966 = dma.hbm_to_vmem [thread:$0]  (!%p964_p6), %s131_s18, 4096, %s133_s22, [#allocation6], %s1195_s28, %s1195_s28, %s1196_s29  }
  0x11   : > { %969 = dma.hbm_to_vmem [thread:$0]  (!%p964_p6), %s145_s25, 512, %s147_s27, [#allocation6], %s1197_s30, %s1197_s30, %s1198_s4  }
  0x12   : > { %s24_s7 = ssub.s32 %s1191_s15, %s1263_s6  ;;  %p34_p8 = scmp.ne.s32.totalorder %s1187_s14, %s1183_s13 }
  0x13   : > { %p25_p7 = scmp.eq.s32.totalorder %s24_s7, 0  ;;  %p35_p9 = scmp.eq.s32.totalorder %s1191_s15, 0 }
  0x14   : > { %p40_p10 = scmp.ne.s32.totalorder %s1183_s13, %s1179_s12  ;;  %p106_p13 = scmp.eq.s32.totalorder %s1244_s19, 1 }
  0x15   : > { %s1274_s9 = scalar_select %p25_p7, %s1187_s14, %s27_s8  }
  0x16   : > { %p1276_p11 = por %p35_p9, %p34_p8  ;;  %p1282_p12 = por %p41_p1, %p40_p10 }
  0x17   : > { %p112_p0 = scmp.eq.s32.totalorder %s775_s5, 1  ;;  %p980_p2 = scmp.lt.s32.totalorder %s1191_s15, 2 }
  0x18   : > { %s160_s16 = sand.u32 1, %s1187_s14   ;;  %p1289_p4 = por %p106_p13, %p34_p8 }
  0x19   : > { %p1293_p6 = por %p112_p0, %p40_p10  ;;  %s780_s21 = sshll.u32 %s160_s16, 3 }
  0x1a   : > { %s781_s22 = sshll.u32 %s1191_s15, 3  ;;  %s164_s26 = scalar_lea.vmem [#allocation2], %s780_s21 }
  0x1b   : > { %s168_s25 = scalar_lea.hbm %s1377_s0, %s781_s22  ;;  %s172_s27 = sshll.u32 %s164_s26, 4  ;;  %s173_s27 = int_to_ptr.vmem [resolvable:$true] %s172_s27 }
  0x1c   : > { %s170_s28 = sshll.u32 %s168_s25, 4  ;;  %p1303_p7 = pnand %p980_p2, %p1276_p11  ;;  %s171_s28 = int_to_ptr.hbm [resolvable:$true] %s170_s28 }
  0x1d   : > { %s161_s30 = scalar_lea.sflag [#allocation3], %s160_s16  ;;  %s1091_s4 = sshra.s32 %s171_s28, 4  ;;  %s1092_s4 = int_to_ptr.hbm [resolvable:$true] %s1091_s4 }
  0x1e   : > { %s1093_s5 = scalar_lea.hbm %s1092_s4, 8  ;;  %p1095_p9 = pneg %p1303_p7 }
  0x1f   : > { %p1094_p8 = scmp.ne.s32.totalorder %s1092_s4, %s1093_s5  ;;  %s1098_s21 = scalar_lea.hbm %s1377_s0, 16 }
  0x20   : > { %p1099_p11 = scmp.lt.s32.totalorder %s1092_s4, %s1377_s0  ;;  %p1100_p0 = scmp.lt.s32.totalorder %s1098_s21, %s1093_s5 }
  0x21   : > { %p1096_p10 = pnand %p1095_p9, %p1094_p8 }
  0x22   : > { %p1101_p2 = por %p1100_p0, %p1099_p11 }
  0x23   : > { %p1097_p13 = pneg %p1096_p10 }
  0x25   : > { %p1102_p5 = pnand %p1101_p2, %p1097_p13 }
  0x27   : > { %1105 = shalt.err (!%p1102_p5)
}
  0x28   : > { %973 = dma.hbm_to_vmem [thread:$0]  (!%p1303_p7), %s171_s28, 128, %s173_s27, %s161_s30  }
  0x29   : > { %181 = sbr.rel (%p1249_p3) target bundleno = 815 (0x32f), region = 32  ;;  %s1320_s16 = sand.u32 (!%p1249_p3), 1, %s1183_s13  }
  0x2a   : > { %s783_s23 = sshll.u32 (!%p1249_p3), %s1320_s16, 3  ;;  %s184_s24 = scalar_lea.sflag (!%p1249_p3), [#allocation3], %s1320_s16 }
  0x2b   : > { %s187_s25 = scalar_lea.vmem (!%p1249_p3), [#allocation2], %s783_s23 }
  0x2e   : > { %1166 = dma.done.wait (%p1282_p12), %s184_s24, 128  }
  0x2f   : > { %1168 = vsyncadd (%p1282_p12), %s184_s24, 4294967168 }
  0x30   : > { %1170 = dma.done.wait (%p41_p1), [#allocation6], 4608  }
  0x31   : > { %1172 = vsyncadd (%p41_p1), [#allocation6], 4294962688  ;;  %v926_v0 = vld [vmem:[#allocation5 + $0x38] sm:$0xff]  ;;  %v925_v1 = vld [vmem:[#allocation5 + $0x30] sm:$0xff]  ;;  %v1199_v10 = vmov 8.0   ;;  %s916_s20 = sshll.u32 %s1244_s19, 3 }
  0x32   : > { %289 = vmatpush.bf16.msra.mxu0 %v926_v0  ;;  %v924_v2 = vld [vmem:[#allocation5 + $0x28] sm:$0xff]  ;;  %v923_v3 = vld [vmem:[#allocation5 + $0x20] sm:$0xff]  ;;  %v922_v4 = vld [vmem:[#allocation5 + $0x18] sm:$0xff]  ;;  %1023 = vrcp.f32 %v1199_v10  ;;  %s681_s27 = scalar_lea.hbm %s1380_s3, %s916_s20  ;;  %s220_s28 = scalar_lea.vmem [#allocation8], %s783_s23 }
  0x33   : > { %v921_v5 = vld [vmem:[#allocation5 + $0x10] sm:$0xff]  ;;  %v920_v6 = vld [vmem:[#allocation5 + $0x8] sm:$0xff]  ;;  %v919_v7 = vld [vmem:[#allocation5] sm:$0xff]  ;;  %s683_s29 = sshll.u32 %s220_s28, 4  ;;  %s685_s30 = sshll.u32 %s681_s27, 4  ;;  %s684_s29 = int_to_ptr.vmem [resolvable:$true] %s683_s29  ;;  %s686_s30 = int_to_ptr.hbm [resolvable:$true] %s685_s30 }
  0x34   : > { %v221_v8 = vld [vmem:[%s187_s25] sm:$0xff]  ;;  %v222_v11 = vld [vmem:[#allocation7] sm:$0xff]  ;;  %v932_v30 = vld [vmem:[#allocation5 + $0x68] sm:$0xff]  ;;  %s671_s4 = scalar_lea.sflag [#allocation4], %s1320_s16  ;;  %s1135_s5 = sshra.s32 %s686_s30, 4  ;;  %s1136_s5 = int_to_ptr.hbm [resolvable:$true] %s1135_s5 }
  0x35   : > { %v223_v9 = vpack.c.bf16 %v221_v8, %v221_v8  ;;  %v240_v13 = vperm.slane %v222_v11, 0  ;;  %v934_v21 = vld [vmem:[#allocation5 + $0x78] sm:$0xff]  ;;  %v933_v26 = vld [vmem:[#allocation5 + $0x70] sm:$0xff]  ;;  %v931_v33 = vld [vmem:[#allocation5 + $0x60] sm:$0xff]  ;;  %s1137_s19 = scalar_lea.hbm %s1136_s5, 8  ;;  %s1141_s21 = scalar_lea.hbm %s1380_s3, 16 }
  0x36   : > { %290 = vmatpush.bf16.msra.mxu0 %v925_v1  ;;  %416 = vmatpush.bf16.msra.mxu1 %v934_v21  ;;  %v930_v36 = vld [vmem:[#allocation5 + $0x58] sm:$0xff]  ;;  %v929_v39 = vld [vmem:[#allocation5 + $0x50] sm:$0xff]  ;;  %v928_v41 = vld [vmem:[#allocation5 + $0x48] sm:$0xff]  ;;  %p1138_p1 = scmp.ne.s32.totalorder %s1136_s5, %s1137_s19  ;;  %p1142_p12 = scmp.lt.s32.totalorder %s1136_s5, %s1380_s3 }
  0x37   : > { %v927_v44 = vld [vmem:[#allocation5 + $0x40] sm:$0xff]  ;;  %v348_v0 = vld [vmem:[#allocation7 + $0x8] sm:$0xff]  ;;  %v941_v10 = vld [vmem:[#allocation5 + $0xb0] sm:$0xff]  ;;  %p1143_p7 = scmp.lt.s32.totalorder %s1141_s21, %s1137_s19 }
  0x38   : > { %v1024_v12 = vpop.eup %1023  ;;  %v367_v1 = vperm.slane %v348_v0, 0  ;;  %p1139_p3 = pnand %p1138_p1, %p1289_p4 }
  0x39   : > { %v310_v14 = vmul.f32 8.0, %v1024_v12  ;;  %vm314_vm0 = vweird.f32 %v1024_v12  ;;  %p1144_p8 = por %p1143_p7, %p1142_p12 }
  0x3a   : > { %291 = vmatpush.bf16.msra.mxu0 %v924_v2  ;;  %417 = vmatpush.bf16.msra.mxu1 %v933_v26  ;;  %p1140_p5 = pneg %p1139_p3 }
  0x3b   : > { %v311_v17 = vsub.f32 1.0, %v310_v14 }
  0x3c   : > { %p1145_p9 = pnand %p1144_p8, %p1140_p5 }
  0x3d   : > { %v312_v20 = vmul.f32 %v1024_v12, %v311_v17 }
  0x3e   : > { %292 = vmatpush.bf16.msra.mxu0 %v923_v3  ;;  %418 = vmatpush.bf16.msra.mxu1 %v932_v30 }
  0x3f   : > { %v313_v25 = vadd.f32 %v1024_v12, %v312_v20 }
  0x41   : > { %v1334_v29 = vsel %vm314_vm0, %v1024_v12, %v313_v25 }
  0x42   : > { %293 = vmatpush.bf16.msra.mxu0 %v922_v4  ;;  %419 = vmatpush.bf16.msra.mxu1 %v931_v33 }
  0x46   : > { %294 = vmatpush.bf16.msra.mxu0 %v921_v5  ;;  %420 = vmatpush.bf16.msra.mxu1 %v930_v36 }
  0x4a   : > { %295 = vmatpush.bf16.msra.mxu0 %v920_v6  ;;  %421 = vmatpush.bf16.msra.mxu1 %v929_v39  ;;  %v942_v6 = vld [vmem:[#allocation5 + $0xb8] sm:$0xff] }
  0x4b   : > { %536 = vmatpush.bf16.msra.mxu2 %v942_v6  ;;  %v945_v6 = vld [vmem:[#allocation5 + $0xd0] sm:$0xff] }
  0x4e   : > { %296 = vmatpush.bf16.msra.mxu0 %v919_v7  ;;  %422 = vmatpush.bf16.msra.mxu1 %v928_v41 }
  0x4f   : > { %537 = vmatpush.bf16.msra.mxu2 %v941_v10 }
  0x51   : > { %297 = vmatmul.bf16.vlgmr.msra.gmra.mxu0 %v223_v9 }
  0x52   : > { %423 = vmatpush.bf16.msra.mxu1 %v927_v44 }
  0xce   : > { %v298_v15 = vpop.f32.mrf.mxu0 }
  0xcf   : > { %v299_v16 = vadd.f32 %v298_v15, %v240_v13  ;;  %v940_v13 = vld [vmem:[#allocation5 + $0xa8] sm:$0xff] }
  0xd0   : > { %538 = vmatpush.bf16.msra.mxu2 %v940_v13 }
  0xd1   : > { %v302_v18 = vmax.f32 %v299_v16, 0.0  ;;  %v939_v16 = vld [vmem:[#allocation5 + $0xa0] sm:$0xff] }
  0xd3   : > { %v303_v19 = vrot.slane %v302_v18, 4 }
  0xd4   : > { %539 = vmatpush.bf16.msra.mxu2 %v939_v16 }
  0xd5   : > { %v304_v22 = vadd.f32 %v303_v19, %v302_v18  ;;  %v938_v19 = vld [vmem:[#allocation5 + $0x98] sm:$0xff] }
  0xd6   : > { %v300_v23 = vpop.f32.mrf.mxu0 }
  0xd7   : > { %v305_v24 = vrot.slane %v304_v22, 2 }
  0xd8   : > { %540 = vmatpush.bf16.msra.mxu2 %v938_v19 }
  0xd9   : > { %v306_v27 = vadd.f32 %v305_v24, %v304_v22  ;;  %v937_v22 = vld [vmem:[#allocation5 + $0x90] sm:$0xff]  ;;  %v936_v24 = vld [vmem:[#allocation5 + $0x88] sm:$0xff] }
  0xdb   : > { %v307_v28 = vrot.slane %v306_v27, 1 }
  0xdc   : > { %541 = vmatpush.bf16.msra.mxu2 %v937_v22 }
  0xdd   : > { %v308_v31 = vadd.f32 %v307_v28, %v306_v27  ;;  %v935_v27 = vld [vmem:[#allocation5 + $0x80] sm:$0xff] }
  0xdf   : > { %v316_v32 = vmul.f32 %v1334_v29, %v308_v31 }
  0xe0   : > { %542 = vmatpush.bf16.msra.mxu2 %v936_v24 }
  0xe1   : > { %v317_v34 = vsub.f32 %v302_v18, %v316_v32 }
  0xe3   : > { %v318_v35 = vmul.f32 %v317_v34, %v317_v34 }
  0xe4   : > { %543 = vmatpush.bf16.msra.mxu2 %v935_v27 }
  0xe5   : > { %v319_v37 = vrot.slane %v318_v35, 4 }
  0xe7   : > { %v320_v38 = vadd.f32 %v319_v37, %v318_v35 }
  0xe9   : > { %v321_v40 = vrot.slane %v320_v38, 2 }
  0xeb   : > { %v322_v42 = vadd.f32 %v321_v40, %v320_v38 }
  0xed   : > { %v323_v43 = vrot.slane %v322_v42, 1 }
  0xef   : > { %v324_v45 = vadd.f32 %v323_v43, %v322_v42 }
  0xf1   : > { %v325_v46 = vmul.f32 %v324_v45, %v1334_v29 }
  0xf3   : > { %v326_v47 = vadd.f32 1e-05, %v325_v46 }
  0xf5   : > { %1025 = vrsqrt.f32 %v326_v47  ;;  %vm333_vm2 = vweird.f32 %v326_v47 }
  0xfb   : > { %v1026_v48 = vpop.eup %1025 }
  0xfc   : > { %v328_v49 = vmul.f32 %v1026_v48, %v326_v47  ;;  %vm334_vm1 = vweird.f32 %v1026_v48 }
  0xfd   : > { %vm335_vm3 = vmor %vm333_vm2, %vm334_vm1 }
  0xfe   : > { %v329_v50 = vmul.f32 %v1026_v48, %v328_v49 }
 0x100   : > { %v330_v51 = vmul.f32 0.5, %v329_v50 }
 0x102   : > { %v331_v52 = vsub.f32 1.5, %v330_v51 }
 0x104   : > { %v332_v53 = vmul.f32 %v1026_v48, %v331_v52 }
 0x106   : > { %v336_v54 = vsel %vm335_vm3, %v1026_v48, %v332_v53  ;;  %v468_v48 = vld [vmem:[#allocation7 + $0x10] sm:$0xff] }
 0x107   : > { %v337_v55 = vmul.f32 %v336_v54, %v222_v11  ;;  %v487_v49 = vperm.slane %v468_v48, 0  ;;  %v950_v54 = vld [vmem:[#allocation5 + $0xf8] sm:$0xff] }
 0x108   : > { %656 = vmatpush.bf16.msra.mxu3 %v950_v54 }
 0x109   : > { %v338_v56 = vmul.f32 %v337_v55, %v316_v32  ;;  %v343_v58 = vperm.slane %v337_v55, 1 }
 0x10b   : > { %v340_v57 = vrot.slane %v338_v56, 7  ;;  %v344_v60 = vmul.f32 %v343_v58, %v302_v18  ;;  %v949_v58 = vld [vmem:[#allocation5 + $0xf0] sm:$0xff] }
 0x10c   : > { %657 = vmatpush.bf16.msra.mxu3 %v949_v58 }
 0x10d   : > { %v342_v59 = vsub.f32 %v222_v11, %v340_v57 }
 0x10f   : > { %v345_v61 = vperm.slane %v342_v59, 2 }
 0x111   : > { %v346_v62 = vadd.f32 %v345_v61, %v344_v60  ;;  %v948_v61 = vld [vmem:[#allocation5 + $0xe8] sm:$0xff] }
 0x112   : > { %658 = vmatpush.bf16.msra.mxu3 %v948_v61 }
 0x113   : > { %v349_v63 = vpack.c.bf16 %v346_v62, %v346_v62 }
 0x115   : > { %424 = vmatmul.bf16.vlgmr.msra.gmra.mxu1 %v349_v63 }
 0x192   : > { %v425_v2 = vpop.f32.mrf.mxu1 }
 0x193   : > { %v426_v3 = vadd.f32 %v425_v2, %v367_v1 }
 0x195   : > { %v429_v4 = vmax.f32 %v426_v3, 0.0  ;;  %v946_v3 = vld [vmem:[#allocation5 + $0xd8] sm:$0xff] }
 0x197   : > { %v430_v5 = vrot.slane %v429_v4, 4 }
 0x199   : > { %v431_v7 = vadd.f32 %v430_v5, %v429_v4 }
 0x19a   : > { %v427_v8 = vpop.f32.mrf.mxu1 }
 0x19b   : > { %v432_v9 = vrot.slane %v431_v7, 2  ;;  %v944_v8 = vld [vmem:[#allocation5 + $0xc8] sm:$0xff] }
 0x19d   : > { %v433_v12 = vadd.f32 %v432_v9, %v431_v7 }
 0x19f   : > { %v434_v11 = vrot.slane %v433_v12, 1 }
 0x1a1   : > { %v435_v14 = vadd.f32 %v434_v11, %v433_v12  ;;  %v943_v12 = vld [vmem:[#allocation5 + $0xc0] sm:$0xff] }
 0x1a3   : > { %v436_v15 = vmul.f32 %v435_v14, %v1334_v29 }
 0x1a5   : > { %v437_v17 = vsub.f32 %v429_v4, %v436_v15 }
 0x1a7   : > { %v438_v18 = vmul.f32 %v437_v17, %v437_v17 }
 0x1a9   : > { %v439_v20 = vrot.slane %v438_v18, 4 }
 0x1ab   : > { %v440_v21 = vadd.f32 %v439_v20, %v438_v18 }
 0x1ad   : > { %v441_v23 = vrot.slane %v440_v21, 2 }
 0x1af   : > { %v442_v25 = vadd.f32 %v441_v23, %v440_v21 }
 0x1b1   : > { %v443_v26 = vrot.slane %v442_v25, 1 }
 0x1b3   : > { %v444_v28 = vadd.f32 %v443_v26, %v442_v25 }
 0x1b5   : > { %v445_v30 = vmul.f32 %v444_v28, %v1334_v29 }
 0x1b7   : > { %v446_v31 = vadd.f32 1e-05, %v445_v30 }
 0x1b9   : > { %1027 = vrsqrt.f32 %v446_v31  ;;  %vm453_vm5 = vweird.f32 %v446_v31 }
 0x1bf   : > { %v1028_v32 = vpop.eup %1027 }
 0x1c0   : > { %v448_v33 = vmul.f32 %v1028_v32, %v446_v31  ;;  %vm454_vm4 = vweird.f32 %v1028_v32  ;;  %v588_v31 = vld [vmem:[#allocation7 + $0x18] sm:$0xff] }
 0x1c1   : > { %vm455_vm6 = vmor %vm453_vm5, %vm454_vm4 }
 0x1c2   : > { %v449_v34 = vmul.f32 %v1028_v32, %v448_v33 }
 0x1c4   : > { %v450_v35 = vmul.f32 0.5, %v449_v34 }
 0x1c6   : > { %v451_v36 = vsub.f32 1.5, %v450_v35 }
 0x1c8   : > { %v452_v37 = vmul.f32 %v1028_v32, %v451_v36 }
 0x1ca   : > { %v456_v38 = vsel %vm455_vm6, %v1028_v32, %v452_v37  ;;  %v607_v32 = vperm.slane %v588_v31, 0 }
 0x1cb   : > { %v457_v39 = vmul.f32 %v456_v38, %v348_v0 }
 0x1cd   : > { %v458_v40 = vmul.f32 %v457_v39, %v436_v15  ;;  %v463_v42 = vperm.slane %v457_v39, 1 }
 0x1cf   : > { %v460_v41 = vrot.slane %v458_v40, 7  ;;  %v464_v44 = vmul.f32 %v463_v42, %v429_v4 }
 0x1d1   : > { %v462_v43 = vsub.f32 %v348_v0, %v460_v41  ;;  %v947_v0 = vld [vmem:[#allocation5 + $0xe0] sm:$0xff] }
 0x1d2   : > { %659 = vmatpush.bf16.msra.mxu3 %v947_v0 }
 0x1d3   : > { %v465_v45 = vperm.slane %v462_v43, 2 }
 0x1d5   : > { %v466_v46 = vadd.f32 %v465_v45, %v464_v44 }
 0x1d6   : > { %660 = vmatpush.bf16.msra.mxu3 %v946_v3 }
 0x1d7   : > { %v469_v47 = vpack.c.bf16 %v466_v46, %v466_v46 }
 0x1d9   : > { %544 = vmatmul.bf16.vlgmr.msra.gmra.mxu2 %v469_v47 }
 0x1da   : > { %661 = vmatpush.bf16.msra.mxu3 %v945_v6 }
 0x1de   : > { %662 = vmatpush.bf16.msra.mxu3 %v944_v8 }
 0x1e2   : > { %663 = vmatpush.bf16.msra.mxu3 %v943_v12 }
 0x25c   : > { %v545_v50 = vpop.f32.mrf.mxu2 }
 0x25d   : > { %v546_v51 = vadd.f32 %v545_v50, %v487_v49 }
 0x25f   : > { %v549_v52 = vmax.f32 %v546_v51, 0.0 }
 0x261   : > { %v550_v53 = vrot.slane %v549_v52, 4 }
 0x263   : > { %v551_v55 = vadd.f32 %v550_v53, %v549_v52 }
 0x264   : > { %v547_v56 = vpop.f32.mrf.mxu2 }
 0x265   : > { %v552_v57 = vrot.slane %v551_v55, 2 }
 0x267   : > { %v553_v59 = vadd.f32 %v552_v57, %v551_v55 }
 0x269   : > { %v554_v60 = vrot.slane %v553_v59, 1 }
 0x26b   : > { %v555_v62 = vadd.f32 %v554_v60, %v553_v59 }
 0x26d   : > { %v556_v63 = vmul.f32 %v555_v62, %v1334_v29 }
 0x26f   : > { %v557_v1 = vsub.f32 %v549_v52, %v556_v63 }
 0x271   : > { %v558_v2 = vmul.f32 %v557_v1, %v557_v1 }
 0x273   : > { %v559_v4 = vrot.slane %v558_v2, 4 }
 0x275   : > { %v560_v5 = vadd.f32 %v559_v4, %v558_v2 }
 0x277   : > { %v561_v7 = vrot.slane %v560_v5, 2 }
 0x279   : > { %v562_v9 = vadd.f32 %v561_v7, %v560_v5 }
 0x27b   : > { %v563_v10 = vrot.slane %v562_v9, 1 }
 0x27d   : > { %v564_v11 = vadd.f32 %v563_v10, %v562_v9 }
 0x27f   : > { %v565_v13 = vmul.f32 %v564_v11, %v1334_v29 }
 0x281   : > { %v566_v14 = vadd.f32 1e-05, %v565_v13 }
 0x283   : > { %1029 = vrsqrt.f32 %v566_v14  ;;  %vm573_vm8 = vweird.f32 %v566_v14 }
 0x289   : > { %v1030_v15 = vpop.eup %1029 }
 0x28a   : > { %v568_v16 = vmul.f32 %v1030_v15, %v566_v14  ;;  %vm574_vm7 = vweird.f32 %v1030_v15 }
 0x28b   : > { %vm575_vm9 = vmor %vm573_vm8, %vm574_vm7 }
 0x28c   : > { %v569_v17 = vmul.f32 %v1030_v15, %v568_v16 }
 0x28e   : > { %v570_v18 = vmul.f32 0.5, %v569_v17 }
 0x290   : > { %v571_v19 = vsub.f32 1.5, %v570_v18 }
 0x292   : > { %v572_v20 = vmul.f32 %v1030_v15, %v571_v19 }
 0x294   : > { %v576_v21 = vsel %vm575_vm9, %v1030_v15, %v572_v20 }
 0x295   : > { %v577_v22 = vmul.f32 %v576_v21, %v468_v48 }
 0x297   : > { %v578_v23 = vmul.f32 %v577_v22, %v556_v63  ;;  %v583_v25 = vperm.slane %v577_v22, 1 }
 0x299   : > { %v580_v24 = vrot.slane %v578_v23, 7  ;;  %v584_v26 = vmul.f32 %v583_v25, %v549_v52 }
 0x29b   : > { %v582_v29 = vsub.f32 %v468_v48, %v580_v24 }
 0x29d   : > { %v585_v27 = vperm.slane %v582_v29, 2 }
 0x29f   : > { %v586_v28 = vadd.f32 %v585_v27, %v584_v26 }
 0x2a1   : > { %v589_v30 = vpack.c.bf16 %v586_v28, %v586_v28 }
 0x2a3   : > { %664 = vmatmul.bf16.vlgmr.msra.gmra.mxu3 %v589_v30 }
 0x326   : > { %v665_v33 = vpop.f32.mrf.mxu3 }
 0x327   : > { %v666_v34 = vadd.f32 %v665_v33, %v607_v32 }
 0x329   : > { %669 = vst [vmem:[%s220_s28] sm:$0xff] %v666_v34 }
 0x32a   : > { %1148 = shalt.err (!%p1145_p9)
}
 0x32b   : > { %961 = dma.vmem_to_hbm [thread:$0]  (%p1289_p4), %s684_s29, 128, %s686_s30, %s671_s4  }
 0x32e   : > { %v667_v35 = vpop.f32.mrf.mxu3 }
 0x32f PF: > { %s697_s16 = sand.u32 1, %s1179_s12   ;;  %p1387_p10 = scmp.ge.s32.totalorder %s1191_s15, 2 }
 0x330   : > { %s698_s23 = scalar_lea.sflag [#allocation4], %s697_s16 }
 0x331   : > { %p975_p13 = pnand %p1387_p10, %p1293_p6 }
 0x333   : > { %p976_p11 = pneg %p975_p13 }
 0x335   : > { %1174 = dma.done.wait (%p976_p11), %s698_s23, 128  }
 0x336   : > { %1176 = vsyncadd (%p976_p11), %s698_s23, 4294967168  ;;  %p17_p0 = scmp.ge.s32.totalorder %s1263_s6, 4   ;;  %s1388_s12 = smov %s1183_s13 }
 0x337   : > { %s1389_s13 = smov %s1187_s14  ;;  %s1390_s14 = smov %s1274_s9 }
 0x338   : > { %s1391_s15 = smov %s1263_s6  ;;  %19 = sbr.rel (!%p17_p0) target bundleno = 6 (0x6), region = 91 }
 0x33d   :  { %704 = vsyncpa [#allocation3], 1 }
 0x33e   :  { %706 = vsyncpa [#allocation3 + $0x1], 1 }
 0x33f   :  { %707 = vsyncpa [#allocation6], 1 }
 0x340   :  { %708 = vsyncpa [#allocation4], 1 }
 0x341   :  { %710 = vsyncpa [#allocation4 + $0x1], 1 }

</bundles_post_ra>
